<compile_context>
chip_gen: v7x
topology: tpu7x:2x2x1
jax: 0.10.0
libtpu: 0.0.40
codegen_flags: <defaults>
</compile_context>

<pallas_src>
from functools import partial

import jax
import jax.numpy as jnp
from jax.experimental import pallas as pl
from jax.experimental.pallas import tpu as pltpu

LANE = 128


def _rpad(n, m=LANE):
    return ((n + m - 1) // m) * m


def _pad2(a, rows, cols):
    out = jnp.zeros((rows, cols), a.dtype)
    return out.at[: a.shape[0], : a.shape[1]].set(a)


# ----------------------------------------------------------------------------
# Single fused kernel: tab Linear+ReLU, then L SAGEConv('mean') layers.
# ----------------------------------------------------------------------------
def _fused_forward_kernel(*refs, n_srcs, n_dsts):
    """Inputs (lane-padded to common width d; matmul operands bf16, biases f32):
         feat [n0, d_in], w_tab [d_in, d], b_tab [1, d],
         per layer l: a_l [n_dst_l, n_src_l], w_l [2d, d] = vstack(W_self, W_neigh), b_l [1, d]
       Output: out [n_dst_last, d] f32.
       Scratch: h [n0, d] f32 -- activations stay resident in VMEM between layers.
    """
    n_layers = len(n_dsts)
    feat_ref, wtab_ref, btab_ref = refs[0], refs[1], refs[2]
    layer_refs = refs[3 : 3 + 3 * n_layers]
    out_ref = refs[3 + 3 * n_layers]
    h_ref = refs[3 + 3 * n_layers + 1]

    # Tab net Linear + mid ReLU (bf16 MXU matmul, f32 accumulate / epilogue).
    h0 = jnp.dot(feat_ref[...], wtab_ref[...], preferred_element_type=jnp.float32)
    h_ref[...] = jnp.maximum(h0 + btab_ref[...], 0.0)

    # SAGE layers: neigh = A @ h_src  (mean aggregation, A row-normalized);
    # self & neighbor matmuls fused as [h_dst | neigh] @ [[W_self],[W_neigh]].
    for l in range(n_layers):
        a_ref, w_ref, b_ref = layer_refs[3 * l : 3 * l + 3]
        n_src, n_dst = n_srcs[l], n_dsts[l]
        hs = h_ref[0:n_src].astype(jnp.bfloat16)                                  # [n_src, d]
        neigh = jnp.dot(a_ref[...], hs, preferred_element_type=jnp.float32)       # [n_dst, d]
        z = jnp.concatenate([hs[0:n_dst], neigh.astype(jnp.bfloat16)], axis=1)    # [n_dst, 2d]
        y = jnp.dot(z, w_ref[...], preferred_element_type=jnp.float32) + b_ref[...]
        if l != n_layers - 1:
            h_ref[0:n_dst] = jnp.maximum(y, 0.0)   # hidden layer: ReLU (dropout==identity)
        else:
            out_ref[...] = y                       # last layer: raw logits


# ----------------------------------------------------------------------------
# Wrapper: glue (embedding gather / concat / padding) + one pallas_call.
# ----------------------------------------------------------------------------
def sage_tabular_forward(blocks, x, cat, params):
    # Glue: embedding gather + concat (ExtendedTabModel input assembly).
    embs = [params["emb_tables"][j][cat[:, j]] for j in range(cat.shape[1])]
    feat = jnp.concatenate([x] + embs, axis=1)            # [n0, tab_in] f32

    n0, tab_in = feat.shape
    n_layers = len(blocks)
    n_srcs = tuple(a.shape[1] for a in blocks)
    n_dsts = tuple(a.shape[0] for a in blocks)
    assert n_srcs[0] == n0
    for l in range(1, n_layers):
        assert n_srcs[l] == n_dsts[l - 1]
    n_classes = params["w_self"][-1].shape[1]

    # One common lane-dense width d for every hidden/output feature dim.
    widths = [params["w_tab"].shape[1]] + [w.shape[1] for w in params["w_self"]]
    d = max(_rpad(w) for w in widths)
    d_in = _rpad(tab_in)

    # Pad + cast parameters/inputs (matmul operands -> bf16, biases stay f32).
    feat_p = _pad2(feat, n0, d_in).astype(jnp.bfloat16)
    wtab_p = _pad2(params["w_tab"], d_in, d).astype(jnp.bfloat16)
    btab_p = _pad2(params["b_tab"].reshape(1, -1), 1, d)
    layer_args = []
    for l in range(n_layers):
        a_p = blocks[l].astype(jnp.bfloat16)
        w_stack = jnp.concatenate(
            [_pad2(params["w_self"][l], d, d), _pad2(params["w_neigh"][l], d, d)], axis=0
        ).astype(jnp.bfloat16)                                          # [2d, d]
        b_p = _pad2(params["b_sage"][l].reshape(1, -1), 1, d)
        layer_args += [a_p, w_stack, b_p]

    inputs = [feat_p, wtab_p, btab_p] + layer_args

    def full_spec(shape):
        return pl.BlockSpec(shape, lambda i: (0,) * len(shape))

    in_specs = [full_spec(t.shape) for t in inputs]
    out_spec = full_spec((n_dsts[-1], d))

    flops = 2.0 * n0 * d_in * d
    for l in range(n_layers):
        flops += 2.0 * n_dsts[l] * n_srcs[l] * d + 2.0 * n_dsts[l] * (2 * d) * d
    bytes_accessed = sum(int(t.size) * t.dtype.itemsize for t in inputs) + n_dsts[-1] * d * 4

    out = pl.pallas_call(
        partial(_fused_forward_kernel, n_srcs=n_srcs, n_dsts=n_dsts),
        out_shape=jax.ShapeDtypeStruct((n_dsts[-1], d), jnp.float32),
        grid=(1,),
        in_specs=in_specs,
        out_specs=out_spec,
        scratch_shapes=[pltpu.VMEM((n0, d), jnp.float32)],
        compiler_params=pltpu.CompilerParams(dimension_semantics=("arbitrary",)),
        cost_estimate=pl.CostEstimate(
            flops=int(flops), transcendentals=0, bytes_accessed=int(bytes_accessed)
        ),
    )(*inputs)
    return out[:, :n_classes]


# ----------------------------------------------------------------------------
# Deterministic setup + run + check
# ----------------------------------------------------------------------------
def _make_block(key, n_dst, n_src):
    # Deterministic dense adjacency with self loops, row-normalized (mean agg).
    a = (jax.random.uniform(key, (n_dst, n_src)) < 0.4).astype(jnp.float32)
    a = a.at[jnp.arange(n_dst), jnp.arange(n_dst)].set(1.0)  # guarantee degree >= 1
    deg = jnp.sum(a, axis=1, keepdims=True)
    return a / deg


if __name__ == "__main__":
    key = jax.random.PRNGKey(0)
    keys = jax.random.split(key, 16)

    # Shapes (small, consistent with the module).
    N0, N1, N2 = 16, 8, 4          # src nodes of block0 / block1, final dst nodes
    NUM_FEATS = 8                  # numerical tabular features
    N_CAT, VOCAB, EMB = 3, 10, 4   # categorical columns, vocab size, embed dim
    TAB_OUT = 32                   # tab net output = SAGE in_feats
    HIDDEN = 32                    # SAGE hidden
    N_CLASSES = 4                  # SAGE output classes

    x = jax.random.normal(keys[0], (N0, NUM_FEATS), dtype=jnp.float32)
    cat = jax.random.randint(keys[1], (N0, N_CAT), 0, VOCAB, dtype=jnp.int32)
    blocks = [_make_block(keys[2], N1, N0), _make_block(keys[3], N2, N1)]

    tab_in = NUM_FEATS + N_CAT * EMB
    params = {
        "emb_tables": [0.1 * jax.random.normal(keys[4 + j], (VOCAB, EMB), jnp.float32)
                       for j in range(N_CAT)],
        "w_tab": 0.1 * jax.random.normal(keys[7], (tab_in, TAB_OUT), jnp.float32),
        "b_tab": 0.01 * jax.random.normal(keys[8], (TAB_OUT,), jnp.float32),
        "w_self": [0.1 * jax.random.normal(keys[9], (TAB_OUT, HIDDEN), jnp.float32),
                   0.1 * jax.random.normal(keys[10], (HIDDEN, N_CLASSES), jnp.float32)],
        "w_neigh": [0.1 * jax.random.normal(keys[11], (TAB_OUT, HIDDEN), jnp.float32),
                    0.1 * jax.random.normal(keys[12], (HIDDEN, N_CLASSES), jnp.float32)],
        "b_sage": [0.01 * jax.random.normal(keys[13], (HIDDEN,), jnp.float32),
                   0.01 * jax.random.normal(keys[14], (N_CLASSES,), jnp.float32)],
    }

    out = sage_tabular_forward(blocks, x, cat, params)
    out = jax.block_until_ready(out)
    assert out.shape == (N2, N_CLASSES) and out.dtype == jnp.float32

    # Reference 1: emulates the kernel's bf16 operand rounding with f32 accumulation.
    def _bf(v):
        return v.astype(jnp.bfloat16).astype(jnp.float32)

    embs = [params["emb_tables"][j][cat[:, j]] for j in range(N_CAT)]
    feat = jnp.concatenate([x] + embs, axis=1)
    h = jnp.maximum(_bf(feat) @ _bf(params["w_tab"]) + params["b_tab"], 0.0)
    for l, a in enumerate(blocks):
        nd = a.shape[0]
        hs = _bf(h)
        neigh = _bf(_bf(a) @ hs)
        y = (hs[:nd] @ _bf(params["w_self"][l])
             + neigh @ _bf(params["w_neigh"][l]) + params["b_sage"][l])
        h = jnp.maximum(y, 0.0) if l != len(blocks) - 1 else y
    assert jnp.allclose(out, h, atol=1e-4, rtol=1e-3)

    # Reference 2: pure-f32 semantic sanity check (loose tol due to bf16 operands).
    h32 = jnp.maximum(feat @ params["w_tab"] + params["b_tab"], 0.0)
    for l, a in enumerate(blocks):
        nd = a.shape[0]
        y32 = (h32[:nd] @ params["w_self"][l]
               + (a @ h32) @ params["w_neigh"][l] + params["b_sage"][l])
        h32 = jnp.maximum(y32, 0.0) if l != len(blocks) - 1 else y32
    assert jnp.allclose(out, h32, atol=3e-2, rtol=3e-2)

    # TODO(synk): SAGE.inference (full-graph layerwise inference with a DGL graph +
    # dataloader) has no clean Pallas equivalent; only forward() is implemented here
    # with dense block adjacencies.
    print("KERNEL_OK")
</pallas_src>

<mosaic_0001>
module attributes {stable_mosaic.version = 11 : i64} {
  func.func @_fused_forward_kernel(%arg0: i32, %arg1: memref<16x128xbf16, #tpu.memory_space<vmem>>, %arg2: memref<128x128xbf16, #tpu.memory_space<vmem>>, %arg3: memref<1x128xf32, #tpu.memory_space<vmem>>, %arg4: memref<8x16xbf16, #tpu.memory_space<vmem>>, %arg5: memref<256x128xbf16, #tpu.memory_space<vmem>>, %arg6: memref<1x128xf32, #tpu.memory_space<vmem>>, %arg7: memref<4x8xbf16, #tpu.memory_space<vmem>>, %arg8: memref<256x128xbf16, #tpu.memory_space<vmem>>, %arg9: memref<1x128xf32, #tpu.memory_space<vmem>>, %arg10: memref<4x128xf32, #tpu.memory_space<vmem>>, %arg11: memref<16x128xf32, #tpu.memory_space<vmem>>) attributes {dimension_semantics = [#tpu.dimension_semantics<arbitrary>], iteration_bounds = array<i64: 1>, scalar_prefetch = 0 : i64, scratch_operands = 1 : i64, tpu.core_type = #tpu.core_type<tc>, window_params = [{pipeline_mode = #tpu.pipeline_mode<synchronous>, transform_indices = @transform_0, window_bounds = array<i64: 16, 128>}, {pipeline_mode = #tpu.pipeline_mode<synchronous>, transform_indices = @transform_1, window_bounds = array<i64: 128, 128>}, {pipeline_mode = #tpu.pipeline_mode<synchronous>, transform_indices = @transform_2, window_bounds = array<i64: 1, 128>}, {pipeline_mode = #tpu.pipeline_mode<synchronous>, transform_indices = @transform_3, window_bounds = array<i64: 8, 16>}, {pipeline_mode = #tpu.pipeline_mode<synchronous>, transform_indices = @transform_4, window_bounds = array<i64: 256, 128>}, {pipeline_mode = #tpu.pipeline_mode<synchronous>, transform_indices = @transform_5, window_bounds = array<i64: 1, 128>}, {pipeline_mode = #tpu.pipeline_mode<synchronous>, transform_indices = @transform_6, window_bounds = array<i64: 4, 8>}, {pipeline_mode = #tpu.pipeline_mode<synchronous>, transform_indices = @transform_7, window_bounds = array<i64: 256, 128>}, {pipeline_mode = #tpu.pipeline_mode<synchronous>, transform_indices = @transform_8, window_bounds = array<i64: 1, 128>}, {pipeline_mode = #tpu.pipeline_mode<synchronous>, transform_indices = @transform_9, window_bounds = array<i64: 4, 128>}]} {
    %c0 = arith.constant 0 : index
    %c0_0 = arith.constant 0 : index
    %0 = vector.load %arg1[%c0, %c0_0] : memref<16x128xbf16, #tpu.memory_space<vmem>>, vector<16x128xbf16>
    %c0_1 = arith.constant 0 : index
    %c0_2 = arith.constant 0 : index
    %1 = vector.load %arg2[%c0_1, %c0_2] : memref<128x128xbf16, #tpu.memory_space<vmem>>, vector<128x128xbf16>
    %cst = arith.constant dense<0.000000e+00> : vector<16x128xf32>
    %2 = tpu.matmul %0, %1, %cst {dimension_numbers = #tpu.dot_dimension_numbers<[1], [0], [0], [1], [0, 0, 1, 1], [], []>} : vector<16x128xbf16>, vector<128x128xbf16>, vector<16x128xf32> -> vector<16x128xf32>
    %c0_3 = arith.constant 0 : index
    %c0_4 = arith.constant 0 : index
    %3 = vector.load %arg3[%c0_3, %c0_4] : memref<1x128xf32, #tpu.memory_space<vmem>>, vector<1x128xf32>
    %4 = vector.broadcast %3 : vector<1x128xf32> to vector<16x128xf32>
    %5 = arith.addf %2, %4 : vector<16x128xf32>
    %cst_5 = arith.constant 0.000000e+00 : f32
    %6 = vector.broadcast %cst_5 : f32 to vector<16x128xf32>
    %7 = arith.maximumf %5, %6 : vector<16x128xf32>
    %c0_6 = arith.constant 0 : index
    %c0_7 = arith.constant 0 : index
    %8 = vector.load %arg11[%c0_6, %c0_7] : memref<16x128xf32, #tpu.memory_space<vmem>>, vector<16x128xf32>
    tpu.vector_store %arg11[%c0_6, %c0_7], %7 {strides = array<i32>} : memref<16x128xf32, #tpu.memory_space<vmem>>, vector<16x128xf32>,
    %c0_8 = arith.constant 0 : index
    %c0_9 = arith.constant 0 : index
    %9 = vector.load %arg11[%c0_8, %c0_9] : memref<16x128xf32, #tpu.memory_space<vmem>>, vector<16x128xf32>
    %10 = arith.truncf %9 : vector<16x128xf32> to vector<16x128xbf16>
    %c0_10 = arith.constant 0 : index
    %c0_11 = arith.constant 0 : index
    %11 = vector.load %arg4[%c0_10, %c0_11] : memref<8x16xbf16, #tpu.memory_space<vmem>>, vector<8x16xbf16>
    %cst_12 = arith.constant dense<0.000000e+00> : vector<8x128xf32>
    %12 = tpu.matmul %11, %10, %cst_12 {dimension_numbers = #tpu.dot_dimension_numbers<[1], [0], [0], [1], [0, 0, 1, 1], [], []>} : vector<8x16xbf16>, vector<16x128xbf16>, vector<8x128xf32> -> vector<8x128xf32>
    %13 = vector.extract_strided_slice %10 {offsets = [0, 0], sizes = [8, 128], strides = [1, 1]} : vector<16x128xbf16> to vector<8x128xbf16>
    %14 = arith.truncf %12 : vector<8x128xf32> to vector<8x128xbf16>
    %15 = tpu.concatenate %13, %14 in 1 : vector<8x128xbf16>, vector<8x128xbf16> -> vector<8x256xbf16>
    %c0_13 = arith.constant 0 : index
    %c0_14 = arith.constant 0 : index
    %16 = vector.load %arg5[%c0_13, %c0_14] : memref<256x128xbf16, #tpu.memory_space<vmem>>, vector<256x128xbf16>
    %cst_15 = arith.constant dense<0.000000e+00> : vector<8x128xf32>
    %17 = tpu.matmul %15, %16, %cst_15 {dimension_numbers = #tpu.dot_dimension_numbers<[1], [0], [0], [1], [0, 0, 1, 1], [], []>} : vector<8x256xbf16>, vector<256x128xbf16>, vector<8x128xf32> -> vector<8x128xf32>
    %c0_16 = arith.constant 0 : index
    %c0_17 = arith.constant 0 : index
    %18 = vector.load %arg6[%c0_16, %c0_17] : memref<1x128xf32, #tpu.memory_space<vmem>>, vector<1x128xf32>
    %19 = vector.broadcast %18 : vector<1x128xf32> to vector<8x128xf32>
    %20 = arith.addf %17, %19 : vector<8x128xf32>
    %cst_18 = arith.constant 0.000000e+00 : f32
    %21 = vector.broadcast %cst_18 : f32 to vector<8x128xf32>
    %22 = arith.maximumf %20, %21 : vector<8x128xf32>
    %c0_19 = arith.constant 0 : index
    %c0_20 = arith.constant 0 : index
    %23 = vector.load %arg11[%c0_19, %c0_20] : memref<16x128xf32, #tpu.memory_space<vmem>>, vector<8x128xf32>
    tpu.vector_store %arg11[%c0_19, %c0_20], %22 {strides = array<i32>} : memref<16x128xf32, #tpu.memory_space<vmem>>, vector<8x128xf32>,
    %c0_21 = arith.constant 0 : index
    %c0_22 = arith.constant 0 : index
    %24 = vector.load %arg11[%c0_21, %c0_22] : memref<16x128xf32, #tpu.memory_space<vmem>>, vector<8x128xf32>
    %25 = arith.truncf %24 : vector<8x128xf32> to vector<8x128xbf16>
    %c0_23 = arith.constant 0 : index
    %c0_24 = arith.constant 0 : index
    %26 = vector.load %arg7[%c0_23, %c0_24] : memref<4x8xbf16, #tpu.memory_space<vmem>>, vector<4x8xbf16>
    %cst_25 = arith.constant dense<0.000000e+00> : vector<4x128xf32>
    %27 = tpu.matmul %26, %25, %cst_25 {dimension_numbers = #tpu.dot_dimension_numbers<[1], [0], [0], [1], [0, 0, 1, 1], [], []>} : vector<4x8xbf16>, vector<8x128xbf16>, vector<4x128xf32> -> vector<4x128xf32>
    %28 = vector.extract_strided_slice %25 {offsets = [0, 0], sizes = [4, 128], strides = [1, 1]} : vector<8x128xbf16> to vector<4x128xbf16>
    %29 = arith.truncf %27 : vector<4x128xf32> to vector<4x128xbf16>
    %30 = tpu.concatenate %28, %29 in 1 : vector<4x128xbf16>, vector<4x128xbf16> -> vector<4x256xbf16>
    %c0_26 = arith.constant 0 : index
    %c0_27 = arith.constant 0 : index
    %31 = vector.load %arg8[%c0_26, %c0_27] : memref<256x128xbf16, #tpu.memory_space<vmem>>, vector<256x128xbf16>
    %cst_28 = arith.constant dense<0.000000e+00> : vector<4x128xf32>
    %32 = tpu.matmul %30, %31, %cst_28 {dimension_numbers = #tpu.dot_dimension_numbers<[1], [0], [0], [1], [0, 0, 1, 1], [], []>} : vector<4x256xbf16>, vector<256x128xbf16>, vector<4x128xf32> -> vector<4x128xf32>
    %c0_29 = arith.constant 0 : index
    %c0_30 = arith.constant 0 : index
    %33 = vector.load %arg9[%c0_29, %c0_30] : memref<1x128xf32, #tpu.memory_space<vmem>>, vector<1x128xf32>
    %34 = vector.broadcast %33 : vector<1x128xf32> to vector<4x128xf32>
    %35 = arith.addf %32, %34 : vector<4x128xf32>
    %c0_31 = arith.constant 0 : index
    %c0_32 = arith.constant 0 : index
    %36 = vector.load %arg10[%c0_31, %c0_32] : memref<4x128xf32, #tpu.memory_space<vmem>>, vector<4x128xf32>
    tpu.vector_store %arg10[%c0_31, %c0_32], %35 {strides = array<i32>} : memref<4x128xf32, #tpu.memory_space<vmem>>, vector<4x128xf32>,
    return
  }
  func.func @transform_0(%arg0: i32) -> (i32, i32) {
    %c0_i32 = arith.constant 0 : i32
    %c0_i32_0 = arith.constant 0 : i32
    %c0_i32_1 = arith.constant 0 : i32
    return %c0_i32, %c0_i32_0 : i32, i32
  }
  func.func @transform_1(%arg0: i32) -> (i32, i32) {
    %c0_i32 = arith.constant 0 : i32
    %c0_i32_0 = arith.constant 0 : i32
    %c0_i32_1 = arith.constant 0 : i32
    return %c0_i32, %c0_i32_0 : i32, i32
  }
  func.func @transform_2(%arg0: i32) -> (i32, i32) {
    %c0_i32 = arith.constant 0 : i32
    %c0_i32_0 = arith.constant 0 : i32
    %c0_i32_1 = arith.constant 0 : i32
    return %c0_i32, %c0_i32_0 : i32, i32
  }
  func.func @transform_3(%arg0: i32) -> (i32, i32) {
    %c0_i32 = arith.constant 0 : i32
    %c0_i32_0 = arith.constant 0 : i32
    %c0_i32_1 = arith.constant 0 : i32
    return %c0_i32, %c0_i32_0 : i32, i32
  }
  func.func @transform_4(%arg0: i32) -> (i32, i32) {
    %c0_i32 = arith.constant 0 : i32
    %c0_i32_0 = arith.constant 0 : i32
    %c0_i32_1 = arith.constant 0 : i32
    return %c0_i32, %c0_i32_0 : i32, i32
  }
  func.func @transform_5(%arg0: i32) -> (i32, i32) {
    %c0_i32 = arith.constant 0 : i32
    %c0_i32_0 = arith.constant 0 : i32
    %c0_i32_1 = arith.constant 0 : i32
    return %c0_i32, %c0_i32_0 : i32, i32
  }
  func.func @transform_6(%arg0: i32) -> (i32, i32) {
    %c0_i32 = arith.constant 0 : i32
    %c0_i32_0 = arith.constant 0 : i32
    %c0_i32_1 = arith.constant 0 : i32
    return %c0_i32, %c0_i32_0 : i32, i32
  }
  func.func @transform_7(%arg0: i32) -> (i32, i32) {
    %c0_i32 = arith.constant 0 : i32
    %c0_i32_0 = arith.constant 0 : i32
    %c0_i32_1 = arith.constant 0 : i32
    return %c0_i32, %c0_i32_0 : i32, i32
  }
  func.func @transform_8(%arg0: i32) -> (i32, i32) {
    %c0_i32 = arith.constant 0 : i32
    %c0_i32_0 = arith.constant 0 : i32
    %c0_i32_1 = arith.constant 0 : i32
    return %c0_i32, %c0_i32_0 : i32, i32
  }
  func.func @transform_9(%arg0: i32) -> (i32, i32) {
    %c0_i32 = arith.constant 0 : i32
    %c0_i32_0 = arith.constant 0 : i32
    %c0_i32_1 = arith.constant 0 : i32
    return %c0_i32, %c0_i32_0 : i32, i32
  }
}

</mosaic_0001>

<bundles_post_ra>
// kernel: tpu_custom_call.1
= control target key start
LH: loop header
LB: loop body
LE: loop exit
PB: predicated region body
PF: predicated region fallthrough
CT: control target
= control target key end

     0   :  { %14 = vsyncpa [#allocation4], 0  ;;  %s1163_s0 = inlined_call_operand.hbm [shape: bf16[16,128], index: 0, kind: input, shape index: {}]   ;;  %s1164_s1 = inlined_call_operand.hbm [shape: bf16[128,128], index: 1, kind: input, shape index: {}]   ;;  %s1165_s2 = inlined_call_operand.vmem [shape: f32[1,128], index: 2, kind: input, shape index: {}]   ;;  %s1166_s3 = inlined_call_operand.vmem [shape: bf16[8,16], index: 3, kind: input, shape index: {}]   ;;  %s1167_s4 = inlined_call_operand.hbm [shape: bf16[256,128], index: 4, kind: input, shape index: {}]   ;;  %s1168_s5 = inlined_call_operand.vmem [shape: f32[1,128], index: 5, kind: input, shape index: {}]   ;;  %s1169_s6 = inlined_call_operand.vmem [shape: bf16[4,8], index: 6, kind: input, shape index: {}]   ;;  %s1170_s7 = inlined_call_operand.hbm [shape: bf16[256,128], index: 7, kind: input, shape index: {}]   ;;  %s1171_s8 = inlined_call_operand.vmem [shape: f32[1,128], index: 8, kind: input, shape index: {}]   ;;  %s1172_s9 = inlined_call_operand.hbm [shape: f32[4,128], index: 9, kind: output, shape index: {}]  }
   0x1   :  { %15 = vsyncpa [#allocation7], 0 }
   0x2   :  { %16 = vsyncpa [#allocation10], 0 }
   0x3   :  { %17 = vsyncpa [#allocation5], 0  ;;  %s987_s30 = smov [#allocation6]   ;;  %s988_s11 = smov [#allocation3]  }
   0x4   :  { %s35_s10 = sshll.u32 %s987_s30, 4  ;;  %s23_s12 = sshll.u32 %s988_s11, 4  ;;  %s36_s10 = int_to_ptr.vmem [resolvable:$true] %s35_s10  ;;  %s1046_s12 = int_to_ptr.vmem [resolvable:$true] %s23_s12 }
   0x5   :  { %s869_s15 = scalar_lea.hbm %s1164_s1, 1024 }
   0x6   :  { %p870_p0 = scmp.ne.s32.totalorder %s1164_s1, %s869_s15  ;;  %p873_p1 = scmp.lt.u32.totalorder %s869_s15, %s1164_s1 }
   0x8   :  { %p875_p2 = pnand %p873_p1, %p870_p0 }
   0xa   :  { %878 = shalt.err (!%p875_p2)
}
   0xb   :  { %s879_s20 = scalar_lea.vmem %s36_s10, 1024  ;;  %p884_p4 = scmp.lt.s32.totalorder %s36_s10, %s36_s10 }
   0xc   :  { %p880_p3 = scmp.ne.s32.totalorder %s36_s10, %s879_s20  ;;  %p885_p5 = scmp.lt.s32.totalorder %s879_s20, %s879_s20 }
   0xe   :  { %p886_p6 = por %p885_p5, %p884_p4 }
  0x10   :  { %p887_p7 = pnand %p886_p6, %p880_p3 }
  0x12   :  { %890 = shalt.err (!%p887_p7)
}
  0x13   :  { %s989_s21 = smov 64   ;;  %s990_s22 = smov 4  }
  0x14   :  { %41 = dma.hbm_to_vmem [thread:$0]  %s1164_s1, 1024, %s36_s10, [#allocation7], %s989_s21, %s989_s21, %s990_s22  }
  0x15   :  { %s891_s27 = scalar_lea.hbm %s1163_s0, 128 }
  0x16   :  { %p892_p8 = scmp.ne.s32.totalorder %s1163_s0, %s891_s27  ;;  %p895_p9 = scmp.lt.u32.totalorder %s891_s27, %s1163_s0 }
  0x18   :  { %p897_p10 = pnand %p895_p9, %p892_p8 }
  0x1a   :  { %900 = shalt.err (!%p897_p10)
}
  0x1b   :  { %s901_s13 = scalar_lea.vmem %s1046_s12, 128  ;;  %p906_p12 = scmp.lt.s32.totalorder %s1046_s12, %s1046_s12 }
  0x1c   :  { %p902_p11 = scmp.ne.s32.totalorder %s1046_s12, %s901_s13  ;;  %p907_p13 = scmp.lt.s32.totalorder %s901_s13, %s901_s13 }
  0x1e   :  { %p908_p0 = por %p907_p13, %p906_p12 }
  0x20   :  { %p909_p1 = pnand %p908_p0, %p902_p11 }
  0x22   :  { %912 = shalt.err (!%p909_p1)
}
  0x23   :  { %29 = dma.hbm_to_vmem [thread:$0]  %s1163_s0, 128, %s1046_s12, [#allocation4], %s989_s21, %s989_s21, %s990_s22  }
  0x24   :  { %s991_s14 = smov [#allocation8]   ;;  %s992_s16 = smov [#allocation9]  }
  0x25   :  { %s51_s15 = sshll.u32 %s991_s14, 4  ;;  %s67_s17 = sshll.u32 %s992_s16, 4  ;;  %s52_s15 = int_to_ptr.vmem [resolvable:$true] %s51_s15  ;;  %s1083_s17 = int_to_ptr.vmem [resolvable:$true] %s67_s17 }
  0x26   :  { %s913_s20 = scalar_lea.hbm %s1167_s4, 2048 }
  0x27   :  { %p914_p2 = scmp.ne.s32.totalorder %s1167_s4, %s913_s20  ;;  %p917_p3 = scmp.lt.u32.totalorder %s913_s20, %s1167_s4 }
  0x29   :  { %p919_p4 = pnand %p917_p3, %p914_p2 }
  0x2b   :  { %922 = shalt.err (!%p919_p4)
}
  0x2c   :  { %s923_s0 = scalar_lea.vmem %s52_s15, 2048  ;;  %p928_p6 = scmp.lt.s32.totalorder %s52_s15, %s52_s15 }
  0x2d   :  { %p924_p5 = scmp.ne.s32.totalorder %s52_s15, %s923_s0  ;;  %p929_p7 = scmp.lt.s32.totalorder %s923_s0, %s923_s0 }
  0x2f   :  { %p930_p8 = por %p929_p7, %p928_p6 }
  0x31   :  { %p931_p9 = pnand %p930_p8, %p924_p5 }
  0x33   :  { %934 = shalt.err (!%p931_p9)
}
  0x34   :  { %57 = dma.hbm_to_vmem [thread:$0]  %s1167_s4, 2048, %s52_s15, [#allocation7], %s989_s21, %s989_s21, %s990_s22  }
  0x35   :  { %s935_s30 = scalar_lea.hbm %s1170_s7, 2048 }
  0x36   :  { %p936_p10 = scmp.ne.s32.totalorder %s1170_s7, %s935_s30  ;;  %p939_p11 = scmp.lt.u32.totalorder %s935_s30, %s1170_s7 }
  0x38   :  { %p941_p12 = pnand %p939_p11, %p936_p10 }
  0x3a   :  { %944 = shalt.err (!%p941_p12)
}
  0x3b   :  { %s945_s14 = scalar_lea.vmem %s1083_s17, 2048  ;;  %p950_p0 = scmp.lt.s32.totalorder %s1083_s17, %s1083_s17 }
  0x3c   :  { %p946_p13 = scmp.ne.s32.totalorder %s1083_s17, %s945_s14  ;;  %p951_p1 = scmp.lt.s32.totalorder %s945_s14, %s945_s14 }
  0x3e   :  { %p952_p2 = por %p951_p1, %p950_p0 }
  0x40   :  { %p953_p3 = pnand %p952_p2, %p946_p13 }
  0x42   :  { %956 = shalt.err (!%p953_p3)
}
  0x43   :  { %73 = dma.hbm_to_vmem [thread:$0]  %s1170_s7, 2048, %s1083_s17, [#allocation10], %s989_s21, %s989_s21, %s990_s22  }
  0x44   :  { %979 = dma.done.wait [#allocation4], 128  }
  0x45   :  { %980 = vsyncadd [#allocation4], 4294967168 }
  0x46   :  { %981 = dma.done.wait [#allocation7], 3072  }
  0x47   :  { %982 = vsyncadd [#allocation7], 4294964224 }
  0x48   :  { %983 = dma.done.wait [#allocation10], 2048  }
  0x49   :  { %984 = vsyncadd [#allocation10], 4294965248  ;;  %v993_v0 = vmov 0.0   ;;  %vm994_vm0 = vmmov 0   ;;  %v828_v1 = vld [vmem:[#allocation6] sm:$0xff]   ;;  %v829_v2 = vld [vmem:[#allocation6 + $0x8] sm:$0xff]  }
  0x4a   :  { %787 = vmatprep.subr.bf16.mxu0 %v993_v0  ;;  %803 = vmatprep.mubr.msk.bf16.mxu0 %vm994_vm0, %v993_v0  ;;  %v830_v3 = vld [vmem:[#allocation6 + $0x10] sm:$0xff]   ;;  %v831_v4 = vld [vmem:[#allocation6 + $0x18] sm:$0xff]   ;;  %v832_v5 = vld [vmem:[#allocation6 + $0x20] sm:$0xff]   ;;  %vm217_vm1 = vcmask 130048   ;;  %vm446_vm2 = vcmask 1043456   ;;  %vm442_vm3 = vcmask 64512  }
  0x4b   :  { %788 = vmatpush3.bf16.msra.mxu0 %v828_v1  ;;  %v833_v6 = vld [vmem:[#allocation6 + $0x28] sm:$0xff]   ;;  %v834_v7 = vld [vmem:[#allocation6 + $0x30] sm:$0xff]   ;;  %v835_v8 = vld [vmem:[#allocation6 + $0x38] sm:$0xff]  }
  0x4c   :  { %789 = vmatprep.subr.bf16.mxu0 %v993_v0  ;;  %v836_v9 = vld [vmem:[#allocation3] sm:$0xff]   ;;  %v837_v10 = vld [vmem:[#allocation8 + $0x40] sm:$0xff]   ;;  %v839_v12 = vld [vmem:[#allocation8 + $0x48] sm:$0xff]  }
  0x4d   :  { %v838_v11 = vld [vmem:[#allocation8] sm:$0xff]   ;;  %741 = vmatprep.subr.bf16.mxu1 %v837_v10  ;;  %v840_v13 = vld [vmem:[#allocation8 + $0x8] sm:$0xff]   ;;  %v841_v14 = vld [vmem:[#allocation8 + $0x50] sm:$0xff]  }
  0x4e   :  { %742 = vmatpush3.bf16.msra.mxu1 %v838_v11  ;;  %v842_v15 = vld [vmem:[#allocation8 + $0x10] sm:$0xff]   ;;  %v843_v16 = vld [vmem:[#allocation8 + $0x58] sm:$0xff]   ;;  %v845_v18 = vld [vmem:[#allocation8 + $0x60] sm:$0xff]  }
  0x4f   :  { %790 = vmatpush3.bf16.msra.mxu0 %v829_v2  ;;  %743 = vmatprep.subr.bf16.mxu1 %v839_v12  ;;  %v844_v17 = vld [vmem:[#allocation8 + $0x18] sm:$0xff]   ;;  %v846_v19 = vld [vmem:[#allocation8 + $0x20] sm:$0xff]   ;;  %v847_v20 = vld [vmem:[#allocation8 + $0x68] sm:$0xff]  }
  0x50   :  { %791 = vmatprep.subr.bf16.mxu0 %v993_v0  ;;  %v848_v21 = vld [vmem:[#allocation8 + $0x28] sm:$0xff]   ;;  %v849_v22 = vld [vmem:[#allocation8 + $0x70] sm:$0xff]   ;;  %v684_v24 = vld [vmem:[%s1165_s2] ss:$0 sm:$0xff] }
  0x51   :  { %v850_v23 = vld [vmem:[#allocation8 + $0x30] sm:$0xff]   ;;  %v216_v34 = vld [vmem:[%s1166_s3] sm:$0xf]  ;;  %v853_v42 = vld [vmem:[#allocation9 + $0x40] sm:$0xff]  }
  0x52   :  { %744 = vmatpush3.bf16.msra.mxu1 %v840_v13  ;;  %v851_v35 = vld [vmem:[#allocation8 + $0x78] sm:$0xff]   ;;  %v854_v43 = vld [vmem:[#allocation9] sm:$0xff]   ;;  %v855_v44 = vld [vmem:[#allocation9 + $0x48] sm:$0xff]  }
  0x53   :  { %792 = vmatpush3.bf16.msra.mxu0 %v830_v3  ;;  %745 = vmatprep.subr.bf16.mxu1 %v841_v14  ;;  %v852_v36 = vld [vmem:[#allocation8 + $0x38] sm:$0xff]   ;;  %v856_v45 = vld [vmem:[#allocation9 + $0x8] sm:$0xff]   ;;  %v857_v46 = vld [vmem:[#allocation9 + $0x50] sm:$0xff]  }
  0x54   :  { %793 = vmatprep.subr.bf16.mxu0 %v993_v0  ;;  %v858_v47 = vld [vmem:[#allocation9 + $0x10] sm:$0xff]   ;;  %v859_v48 = vld [vmem:[#allocation9 + $0x58] sm:$0xff]   ;;  %v861_v50 = vld [vmem:[#allocation9 + $0x60] sm:$0xff]  }
  0x55   :  { %v860_v49 = vld [vmem:[#allocation9 + $0x18] sm:$0xff]   ;;  %v862_v51 = vld [vmem:[#allocation9 + $0x20] sm:$0xff]   ;;  %v863_v52 = vld [vmem:[#allocation9 + $0x68] sm:$0xff]  }
  0x56   :  { %746 = vmatpush3.bf16.msra.mxu1 %v842_v15  ;;  %v864_v53 = vld [vmem:[#allocation9 + $0x28] sm:$0xff]   ;;  %v865_v54 = vld [vmem:[#allocation9 + $0x70] sm:$0xff]   ;;  %v695_v57 = vld [vmem:[%s1168_s5] ss:$0 sm:$0xff] }
  0x57   :  { %794 = vmatpush3.bf16.msra.mxu0 %v831_v4  ;;  %747 = vmatprep.subr.bf16.mxu1 %v843_v16  ;;  %v866_v55 = vld [vmem:[#allocation9 + $0x30] sm:$0xff]   ;;  %v441_v2 = vld [vmem:[%s1169_s6] sm:$0x3]  ;;  %s995_s6 = smov [#allocation11]  }
  0x58   :  { %795 = vmatprep.subr.bf16.mxu0 %v993_v0  ;;  %v867_v3 = vld [vmem:[#allocation9 + $0x78] sm:$0xff]   ;;  %s673_s20 = sshll.u32 %s995_s6, 4  ;;  %s674_s20 = int_to_ptr.vmem [resolvable:$true] %s673_s20 }
  0x59   :  { %v868_v4 = vld [vmem:[#allocation9 + $0x38] sm:$0xff]   ;;  %s957_s23 = scalar_lea.vmem %s674_s20, 64  ;;  %p962_p5 = scmp.lt.s32.totalorder %s674_s20, %s674_s20 }
  0x5a   :  { %748 = vmatpush3.bf16.msra.mxu1 %v844_v17  ;;  %v713_v11 = vld [vmem:[%s1171_s8] ss:$0 sm:$0xff]  ;;  %p958_p4 = scmp.ne.s32.totalorder %s674_s20, %s957_s23  ;;  %p963_p6 = scmp.lt.s32.totalorder %s957_s23, %s957_s23 }
  0x5b   :  { %796 = vmatpush3.bf16.msra.mxu0 %v832_v5  ;;  %749 = vmatprep.subr.bf16.mxu1 %v845_v18 }
  0x5c   :  { %797 = vmatprep.subr.bf16.mxu0 %v993_v0  ;;  %p964_p7 = por %p963_p6, %p962_p5 }
  0x5e   :  { %750 = vmatpush3.bf16.msra.mxu1 %v846_v19  ;;  %p965_p8 = pnand %p964_p7, %p958_p4 }
  0x5f   :  { %798 = vmatpush3.bf16.msra.mxu0 %v833_v6  ;;  %751 = vmatprep.subr.bf16.mxu1 %v847_v20 }
  0x60   :  { %799 = vmatprep.subr.bf16.mxu0 %v993_v0 }
  0x62   :  { %752 = vmatpush3.bf16.msra.mxu1 %v848_v21 }
  0x63   :  { %800 = vmatpush3.bf16.msra.mxu0 %v834_v7  ;;  %753 = vmatprep.subr.bf16.mxu1 %v849_v22 }
  0x64   :  { %801 = vmatprep.subr.bf16.mxu0 %v993_v0 }
  0x66   :  { %754 = vmatpush3.bf16.msra.mxu1 %v850_v23 }
  0x67   :  { %802 = vmatpush3.bf16.msra.mxu0 %v835_v8  ;;  %755 = vmatprep.subr.bf16.mxu1 %v851_v35 }
  0x68   :  { %807 = vmatprep.subr.bf16.mxu0 %v993_v0 }
  0x6a   :  { %804 = vmatmul.mubr.bf16.vlgmr.msra.gmra.mrb[0].mxu0 %v836_v9  ;;  %756 = vmatpush3.bf16.msra.mxu1 %v852_v36 }
  0x6b   :  { %809 = vmatprep.mubr.msk.bf16.mxu0 %vm994_vm0, %v993_v0  ;;  %765 = vmatprep.subr.bf16.mxu1 %v853_v42 }
 0x13d   :  { %v202_v25 = vpop.f32.mrb[0].mxu0 }
 0x13e   :  { %v203_v26 = vadd.f32 %v684_v24, %v202_v25  ;;  %v805_v27 = vpop.f32.mrb[1].mxu0 }
 0x13f   :  { %v205_v28 = vpop.f32.mrb[2].mxu0 }
 0x140   :  { %v206_v29 = vadd.f32 %v684_v24, %v205_v28  ;;  %v806_v30 = vpop.f32.mrb[3].mxu0  ;;  %v209_v31 = vmax.f32 %v203_v26, 0.0 }
 0x142   :  { %v210_v32 = vmax.f32 %v206_v29, 0.0 }
 0x144   :  { %v215_v33 = vpack.c.bf16 %v210_v32, %v209_v31 }
 0x146   :  { %808 = vmatpush3.bf16.msra.mxu0 %v215_v33 }
 0x147   :  { %813 = vmatprep.subr.bf16.mxu0 %v993_v0 }
 0x149   :  { %810 = vmatmul.mubr.msk.bf16.vlgmr.msra.gmra.mrb[4].mxu0 %vm217_vm1, %v216_v34 }
 0x14a   :  { %815 = vmatprep.mubr.msk.bf16.mxu0 %vm994_vm0, %v993_v0 }
 0x21c   :  { %v255_v37 = vpop.f32.mrb[4].mxu0 }
 0x21d   :  { %v811_v38 = vpop.f32.mrb[5].mxu0  ;;  %v261_v39 = vpack.c.bf16 %v255_v37, %v255_v37 }
 0x21e   :  { %v258_v40 = vpop.f32.mrb[6].mxu0 }
 0x21f   :  { %v812_v41 = vpop.f32.mrb[7].mxu0  ;;  %429 = vmatprep.mubr.bf16.mxu1 %v261_v39 }
 0x220   :  { %430 = vmatmul.mubr.bf16.vlgmr.msra.gmra.mrb[0].mxu1 %v215_v33 }
 0x221   :  { %766 = vmatpush3.bf16.msra.mxu1 %v854_v43 }
 0x222   :  { %767 = vmatprep.subr.bf16.mxu1 %v855_v44 }
 0x225   :  { %768 = vmatpush3.bf16.msra.mxu1 %v856_v45 }
 0x226   :  { %769 = vmatprep.subr.bf16.mxu1 %v857_v46 }
 0x229   :  { %770 = vmatpush3.bf16.msra.mxu1 %v858_v47 }
 0x22a   :  { %771 = vmatprep.subr.bf16.mxu1 %v859_v48 }
 0x22d   :  { %772 = vmatpush3.bf16.msra.mxu1 %v860_v49 }
 0x22e   :  { %773 = vmatprep.subr.bf16.mxu1 %v861_v50 }
 0x231   :  { %774 = vmatpush3.bf16.msra.mxu1 %v862_v51 }
 0x232   :  { %775 = vmatprep.subr.bf16.mxu1 %v863_v52 }
 0x235   :  { %776 = vmatpush3.bf16.msra.mxu1 %v864_v53 }
 0x236   :  { %777 = vmatprep.subr.bf16.mxu1 %v865_v54 }
 0x239   :  { %778 = vmatpush3.bf16.msra.mxu1 %v866_v55 }
 0x23a   :  { %779 = vmatprep.subr.bf16.mxu1 %v867_v3 }
 0x23d   :  { %780 = vmatpush3.bf16.msra.mxu1 %v868_v4 }
 0x2f3   :  { %v757_v56 = vpop.f32.mrb[0].mxu1 }
 0x2f4   :  { %v758_v58 = vpop.f32.mrb[1].mxu1 }
 0x2f5   :  { %v759_v59 = vadd.f32 %v758_v58, %v757_v56  ;;  %v760_v60 = vpop.f32.mrb[2].mxu1 }
 0x2f6   :  { %v761_v61 = vpop.f32.mrb[3].mxu1 }
 0x2f7   :  { %v432_v62 = vadd.f32 %v759_v59, %v695_v57 }
 0x2f9   :  { %v437_v63 = vmax.f32 %v432_v62, 0.0 }
 0x2fb   :  { %v440_v0 = vpack.c.bf16 %v437_v63, %v437_v63 }
 0x2fd   :  { %v448_v1 = vsel %vm446_vm2, %v440_v0, 0 }
 0x2fe   :  { %814 = vmatpush3.bf16.msra.mxu0 %v448_v1 }
 0x301   :  { %816 = vmatmul.mubr.msk.bf16.vlgmr.msra.gmra.mrb[8].mxu0 %vm442_vm3, %v441_v2 }
 0x3d4   :  { %v484_v5 = vpop.f32.mrb[8].mxu0 }
 0x3d5   :  { %v490_v6 = vpack.c.bf16 %v484_v5, %v484_v5  ;;  %v817_v7 = vpop.f32.mrb[9].mxu0 }
 0x3d6   :  { %v487_v8 = vpop.f32.mrb[10].mxu0 }
 0x3d7   :  { %658 = vmatprep.mubr.bf16.mxu1 %v490_v6  ;;  %v818_v9 = vpop.f32.mrb[11].mxu0 }
 0x3d8   :  { %659 = vmatmul.mubr.bf16.vlgmr.msra.gmra.mrb[4].mxu1 %v440_v0 }
 0x4ab   :  { %v781_v10 = vpop.f32.mrb[4].mxu1 }
 0x4ac   :  { %v782_v12 = vpop.f32.mrb[5].mxu1 }
 0x4ad   :  { %v783_v13 = vadd.f32 %v782_v12, %v781_v10  ;;  %v784_v14 = vpop.f32.mrb[6].mxu1 }
 0x4ae   :  { %v785_v15 = vpop.f32.mrb[7].mxu1 }
 0x4af   :  { %v661_v16 = vadd.f32 %v783_v13, %v713_v11 }
 0x4b1   :  { %666 = vst [vmem:[#allocation11] sm:$0xf] %v661_v16 }
 0x4b2   :  { %968 = shalt.err (!%p965_p8)
}
 0x4b3   :  { %s969_s8 = scalar_lea.hbm %s1172_s9, 64 }
 0x4b4   :  { %p970_p9 = scmp.ne.s32.totalorder %s1172_s9, %s969_s8  ;;  %p973_p10 = scmp.lt.u32.totalorder %s969_s8, %s1172_s9 }
 0x4b6   :  { %p975_p11 = pnand %p973_p10, %p970_p9 }
 0x4b8   :  { %978 = shalt.err (!%p975_p11)
}
 0x4b9   :  { %676 = dma.vmem_to_hbm [thread:$0]  %s674_s20, 64, %s1172_s9, [#allocation5]  }
 0x4ba   :  { %985 = dma.done.wait [#allocation5], 64  }
 0x4bb   :  { %986 = vsyncadd [#allocation5], 4294967232 }
 0x4bc   :  { %680 = vsyncpa [#allocation4], 1 }
 0x4bd   :  { %681 = vsyncpa [#allocation7], 1 }
 0x4be   :  { %682 = vsyncpa [#allocation10], 1 }
 0x4bf   :  { %683 = vsyncpa [#allocation5], 1 }

</bundles_post_ra>
